<compile_context>
chip_gen: v5e
topology: v5e:2x2
jax: 0.10.0
libtpu: 0.0.40
codegen_flags: <defaults>
</compile_context>

<pallas_src>
import jax
import jax.numpy as jnp
from jax import lax
from jax.experimental import pallas as pl
from jax.experimental.pallas import tpu as pltpu


def _round_up(x, m):
    return ((x + m - 1) // m) * m


def ffn_kernel(x_ref, w1_ref, b1_ref, w2_ref, b2_ref, o_ref, acc_ref):
    # x_ref  : (TM, E)   tile of input rows
    # w1_ref : (TH, E)   chunk of lin1 weight (stored [H, E], NOT transposed)
    # b1_ref : (1, TH)   chunk of lin1 bias
    # w2_ref : (E, TH)   chunk of lin2 weight (stored [E, H], NOT transposed)
    # b2_ref : (1, E)    lin2 bias
    # o_ref  : (TM, E)   output tile
    # acc_ref: (TM, E)   f32 accumulator, resident across the H-chunk axis
    j = pl.program_id(1)

    @pl.when(j == 0)
    def _init():
        acc_ref[...] = jnp.zeros_like(acc_ref)

    x = x_ref[...]
    # h_chunk = x @ W1_chunk^T + b1_chunk   (contract E with E; W1 stored [H,E])
    h = lax.dot_general(
        x, w1_ref[...], (((1,), (1,)), ((), ())),
        preferred_element_type=jnp.float32,
    )
    h = jnp.maximum(h + b1_ref[...], 0.0)         # bias + ReLU
    # Narrow MXU inputs again (bf16 when the model runs in bf16); keep f32 acc.
    h = h.astype(x.dtype)
    # acc += h_chunk @ W2_chunk^T   (contract TH with TH; W2 stored [E,H])
    acc_ref[...] += lax.dot_general(
        h, w2_ref[...], (((1,), (1,)), ((), ())),
        preferred_element_type=jnp.float32,
    )

    @pl.when(j == pl.num_programs(1) - 1)
    def _finalize():
        o_ref[...] = (acc_ref[...] + b2_ref[...]).astype(o_ref.dtype)


def _pick_hidden_tile(H):
    # Largest 128-multiple chunk (<= 2048) that divides H; fall back to full H.
    for th in (2048, 1024, 512, 256, 128):
        if H % th == 0:
            return th
    return H


def feed_forward(x, w1, b1, w2, b2, *, tm=256, th=None):
    """x: [B, S, E]; w1: [4E, E]; b1: [4E]; w2: [E, 4E]; b2: [E]."""
    B, S, E = x.shape
    H, E1 = w1.shape
    assert E1 == E and w2.shape == (E, H) and b1.shape == (H,) and b2.shape == (E,)
    M = B * S

    # Row-tile: large (up to `tm`), multiple of 8; pad M up instead of asserting.
    tm = min(tm, _round_up(M, 8))
    M_pad = _round_up(M, tm)

    # Hidden-dim chunk (multiple of 128, or the whole H).
    if th is None:
        th = _pick_hidden_tile(H)
    assert H % th == 0 and (th % 128 == 0 or th == H)

    x2d = x.reshape(M, E)
    if M_pad != M:
        x2d = jnp.pad(x2d, ((0, M_pad - M), (0, 0)))
    b1_2d = b1.reshape(1, H)
    b2_2d = b2.reshape(1, E)

    # Per-generation VMEM budget: size the scoped limit from the real tile
    # footprint, capped well under the chip's physical VMEM (64 MiB on v7x).
    xi = x.dtype.itemsize
    wi = w1.dtype.itemsize
    est = (2 * tm * E * xi          # x tile (double-buffered)
           + 2 * th * E * wi        # W1 chunk
           + 2 * E * th * wi        # W2 chunk
           + 2 * (th + E) * b1.dtype.itemsize   # biases
           + 2 * tm * E * xi        # out tile
           + tm * E * 4)            # f32 accumulator scratch
    try:
        phys_vmem = pltpu.get_tpu_info().vmem_capacity_bytes
    except Exception:
        phys_vmem = 64 << 20
    vmem_limit = max(32 << 20, min(int(1.5 * est) + (4 << 20),
                                   int(phys_vmem * 0.75)))

    grid = (M_pad // tm, H // th)

    out2d = pl.pallas_call(
        ffn_kernel,
        out_shape=jax.ShapeDtypeStruct((M_pad, E), x.dtype),
        grid_spec=pltpu.PrefetchScalarGridSpec(
            num_scalar_prefetch=0,
            grid=grid,
            in_specs=[
                pl.BlockSpec((tm, E), lambda i, j: (i, 0)),   # x rows
                pl.BlockSpec((th, E), lambda i, j: (j, 0)),   # W1 chunk  [H,E]
                pl.BlockSpec((1, th), lambda i, j: (0, j)),   # b1 chunk
                pl.BlockSpec((E, th), lambda i, j: (0, j)),   # W2 chunk  [E,H]
                pl.BlockSpec((1, E), lambda i, j: (0, 0)),    # b2
            ],
            out_specs=pl.BlockSpec((tm, E), lambda i, j: (i, 0)),
            scratch_shapes=[pltpu.VMEM((tm, E), jnp.float32)],
        ),
        compiler_params=pltpu.CompilerParams(
            dimension_semantics=("parallel", "arbitrary"),
            vmem_limit_bytes=vmem_limit,
        ),
    )(x2d, w1, b1_2d, w2, b2_2d)

    return out2d[:M].reshape(B, S, E)


if __name__ == "__main__":
    # --- Test 1: small, deterministic setup matching the module spec ---
    # batch=2, seq=8, embed=32 (hidden = 4*32 = 128)
    B, S, E = 2, 8, 32
    H = 4 * E

    key = jax.random.PRNGKey(0)
    kx, k1, kb1, k2, kb2 = jax.random.split(key, 5)

    x = jax.random.normal(kx, (B, S, E), dtype=jnp.float32)
    bound1 = 1.0 / (E ** 0.5)
    bound2 = 1.0 / (H ** 0.5)
    w1 = jax.random.uniform(k1, (H, E), minval=-bound1, maxval=bound1, dtype=jnp.float32)
    b1 = jax.random.uniform(kb1, (H,), minval=-bound1, maxval=bound1, dtype=jnp.float32)
    w2 = jax.random.uniform(k2, (E, H), minval=-bound2, maxval=bound2, dtype=jnp.float32)
    b2 = jax.random.uniform(kb2, (E,), minval=-bound2, maxval=bound2, dtype=jnp.float32)

    out = feed_forward(x, w1, b1, w2, b2)
    out = jax.block_until_ready(out)

    ref = jnp.maximum(x @ w1.T + b1, 0.0) @ w2.T + b2
    assert out.shape == (B, S, E)
    assert jnp.allclose(out, ref, atol=1e-5, rtol=1e-5)

    # --- Test 2: exercises M padding, multiple M tiles and multiple H chunks ---
    B2, S2, E2 = 3, 67, 128          # M = 201 (ragged), H = 512
    H2 = 4 * E2
    key2 = jax.random.PRNGKey(0)
    kx, k1, kb1, k2, kb2 = jax.random.split(key2, 5)
    x_b = jax.random.normal(kx, (B2, S2, E2), dtype=jnp.float32)
    b1a = 1.0 / (E2 ** 0.5)
    b2a = 1.0 / (H2 ** 0.5)
    w1_b = jax.random.uniform(k1, (H2, E2), minval=-b1a, maxval=b1a, dtype=jnp.float32)
    b1_b = jax.random.uniform(kb1, (H2,), minval=-b1a, maxval=b1a, dtype=jnp.float32)
    w2_b = jax.random.uniform(k2, (E2, H2), minval=-b2a, maxval=b2a, dtype=jnp.float32)
    b2_b = jax.random.uniform(kb2, (E2,), minval=-b2a, maxval=b2a, dtype=jnp.float32)

    out_b = feed_forward(x_b, w1_b, b1_b, w2_b, b2_b, tm=128, th=128)
    out_b = jax.block_until_ready(out_b)
    ref_b = jnp.maximum(x_b @ w1_b.T + b1_b, 0.0) @ w2_b.T + b2_b
    assert out_b.shape == (B2, S2, E2)
    assert jnp.allclose(out_b, ref_b, atol=1e-3, rtol=1e-3)

    print("KERNEL_OK")
</pallas_src>

<mosaic_0001>
module attributes {stable_mosaic.version = 11 : i64} {
  func.func @ffn_kernel(%arg0: i32, %arg1: i32, %arg2: memref<16x32xf32, #tpu.memory_space<vmem>>, %arg3: memref<128x32xf32, #tpu.memory_space<vmem>>, %arg4: memref<1x128xf32, #tpu.memory_space<vmem>>, %arg5: memref<32x128xf32, #tpu.memory_space<vmem>>, %arg6: memref<1x32xf32, #tpu.memory_space<vmem>>, %arg7: memref<16x32xf32, #tpu.memory_space<vmem>>, %arg8: memref<16x32xf32, #tpu.memory_space<vmem>>) attributes {dimension_semantics = [#tpu.dimension_semantics<parallel>, #tpu.dimension_semantics<arbitrary>], iteration_bounds = array<i64: 1, 1>, scalar_prefetch = 0 : i64, scratch_operands = 1 : i64, tpu.core_type = #tpu.core_type<tc>, window_params = [{transform_indices = @transform_0, window_bounds = array<i64: 16, 32>}, {transform_indices = @transform_1, window_bounds = array<i64: 128, 32>}, {transform_indices = @transform_2, window_bounds = array<i64: 1, 128>}, {transform_indices = @transform_3, window_bounds = array<i64: 32, 128>}, {pipeline_mode = #tpu.pipeline_mode<synchronous>, transform_indices = @transform_4, window_bounds = array<i64: 1, 32>}, {transform_indices = @transform_5, window_bounds = array<i64: 16, 32>}]} {
    %c0_i32 = arith.constant 0 : i32
    %0 = arith.cmpi eq, %arg1, %c0_i32 : i32
    %1 = arith.extui %0 : i1 to i32
    %c0_i32_0 = arith.constant 0 : i32
    %2 = arith.cmpi ne, %1, %c0_i32_0 : i32
    scf.if %2 {
      %cst_16 = arith.constant 0.000000e+00 : f32
      %19 = vector.broadcast %cst_16 : f32 to vector<16x32xf32>
      %c0_17 = arith.constant 0 : index
      %c0_18 = arith.constant 0 : index
      %20 = vector.load %arg8[%c0_17, %c0_18] : memref<16x32xf32, #tpu.memory_space<vmem>>, vector<16x32xf32>
      tpu.vector_store %arg8[%c0_17, %c0_18], %19 {strides = array<i32>} : memref<16x32xf32, #tpu.memory_space<vmem>>, vector<16x32xf32>,
    } else {
    }
    %c0 = arith.constant 0 : index
    %c0_1 = arith.constant 0 : index
    %3 = vector.load %arg2[%c0, %c0_1] : memref<16x32xf32, #tpu.memory_space<vmem>>, vector<16x32xf32>
    %c0_2 = arith.constant 0 : index
    %c0_3 = arith.constant 0 : index
    %4 = vector.load %arg3[%c0_2, %c0_3] : memref<128x32xf32, #tpu.memory_space<vmem>>, vector<128x32xf32>
    %cst = arith.constant dense<0.000000e+00> : vector<16x128xf32>
    %5 = tpu.matmul %3, %4, %cst {dimension_numbers = #tpu.dot_dimension_numbers<[1], [1], [0], [0], [0, 0, 1, 0], [], []>} : vector<16x32xf32>, vector<128x32xf32>, vector<16x128xf32> -> vector<16x128xf32>
    %c0_4 = arith.constant 0 : index
    %c0_5 = arith.constant 0 : index
    %6 = vector.load %arg4[%c0_4, %c0_5] : memref<1x128xf32, #tpu.memory_space<vmem>>, vector<1x128xf32>
    %7 = vector.broadcast %6 : vector<1x128xf32> to vector<16x128xf32>
    %8 = arith.addf %5, %7 : vector<16x128xf32>
    %cst_6 = arith.constant 0.000000e+00 : f32
    %9 = vector.broadcast %cst_6 : f32 to vector<16x128xf32>
    %10 = arith.maximumf %8, %9 : vector<16x128xf32>
    %c0_7 = arith.constant 0 : index
    %c0_8 = arith.constant 0 : index
    %11 = vector.load %arg8[%c0_7, %c0_8] : memref<16x32xf32, #tpu.memory_space<vmem>>, vector<16x32xf32>
    %c0_9 = arith.constant 0 : index
    %c0_10 = arith.constant 0 : index
    %12 = vector.load %arg5[%c0_9, %c0_10] : memref<32x128xf32, #tpu.memory_space<vmem>>, vector<32x128xf32>
    %cst_11 = arith.constant dense<0.000000e+00> : vector<16x32xf32>
    %13 = tpu.matmul %10, %12, %cst_11 {dimension_numbers = #tpu.dot_dimension_numbers<[1], [1], [0], [0], [0, 0, 1, 0], [], []>} : vector<16x128xf32>, vector<32x128xf32>, vector<16x32xf32> -> vector<16x32xf32>
    %14 = arith.addf %11, %13 : vector<16x32xf32>
    %c0_12 = arith.constant 0 : index
    %c0_13 = arith.constant 0 : index
    %15 = vector.load %arg8[%c0_12, %c0_13] : memref<16x32xf32, #tpu.memory_space<vmem>>, vector<16x32xf32>
    tpu.vector_store %arg8[%c0_12, %c0_13], %14 {strides = array<i32>} : memref<16x32xf32, #tpu.memory_space<vmem>>, vector<16x32xf32>,
    %c0_i32_14 = arith.constant 0 : i32
    %16 = arith.cmpi eq, %arg1, %c0_i32_14 : i32
    %17 = arith.extui %16 : i1 to i32
    %c0_i32_15 = arith.constant 0 : i32
    %18 = arith.cmpi ne, %17, %c0_i32_15 : i32
    scf.if %18 {
      %c0_16 = arith.constant 0 : index
      %c0_17 = arith.constant 0 : index
      %19 = vector.load %arg8[%c0_16, %c0_17] : memref<16x32xf32, #tpu.memory_space<vmem>>, vector<16x32xf32>
      %c0_18 = arith.constant 0 : index
      %c0_19 = arith.constant 0 : index
      %20 = vector.load %arg6[%c0_18, %c0_19] : memref<1x32xf32, #tpu.memory_space<vmem>>, vector<1x32xf32>
      %21 = vector.broadcast %20 : vector<1x32xf32> to vector<16x32xf32>
      %22 = arith.addf %19, %21 : vector<16x32xf32>
      %c0_20 = arith.constant 0 : index
      %c0_21 = arith.constant 0 : index
      %23 = vector.load %arg7[%c0_20, %c0_21] : memref<16x32xf32, #tpu.memory_space<vmem>>, vector<16x32xf32>
      tpu.vector_store %arg7[%c0_20, %c0_21], %22 {strides = array<i32>} : memref<16x32xf32, #tpu.memory_space<vmem>>, vector<16x32xf32>,
    } else {
    }
    return
  }
  func.func @transform_0(%arg0: i32, %arg1: i32) -> (i32, i32) {
    %c0_i32 = arith.constant 0 : i32
    %c0_i32_0 = arith.constant 0 : i32
    return %arg0, %c0_i32 : i32, i32
  }
  func.func @transform_1(%arg0: i32, %arg1: i32) -> (i32, i32) {
    %c0_i32 = arith.constant 0 : i32
    %c0_i32_0 = arith.constant 0 : i32
    return %arg1, %c0_i32 : i32, i32
  }
  func.func @transform_2(%arg0: i32, %arg1: i32) -> (i32, i32) {
    %c0_i32 = arith.constant 0 : i32
    %c0_i32_0 = arith.constant 0 : i32
    return %c0_i32, %arg1 : i32, i32
  }
  func.func @transform_3(%arg0: i32, %arg1: i32) -> (i32, i32) {
    %c0_i32 = arith.constant 0 : i32
    %c0_i32_0 = arith.constant 0 : i32
    return %c0_i32, %arg1 : i32, i32
  }
  func.func @transform_4(%arg0: i32, %arg1: i32) -> (i32, i32) {
    %c0_i32 = arith.constant 0 : i32
    %c0_i32_0 = arith.constant 0 : i32
    %c0_i32_1 = arith.constant 0 : i32
    return %c0_i32, %c0_i32_0 : i32, i32
  }
  func.func @transform_5(%arg0: i32, %arg1: i32) -> (i32, i32) {
    %c0_i32 = arith.constant 0 : i32
    %c0_i32_0 = arith.constant 0 : i32
    return %arg0, %c0_i32 : i32, i32
  }
}

</mosaic_0001>

<bundles_post_ra>
// kernel: tpu_custom_call.1
= control target key start
LH: loop header
LB: loop body
LE: loop exit
PB: predicated region body
PF: predicated region fallthrough
CT: control target
= control target key end

     0   :  { %vm25_vm0 = vcmask 261120   ;;  %s409_s0 = inlined_call_operand.vmem [shape: f32[16,32], index: 0, kind: input, shape index: {}]   ;;  %s410_s1 = inlined_call_operand.vmem [shape: f32[128,32], index: 1, kind: input, shape index: {}]   ;;  %s411_s2 = inlined_call_operand.vmem [shape: f32[1,128], index: 2, kind: input, shape index: {}]   ;;  %s412_s3 = inlined_call_operand.vmem [shape: f32[32,128], index: 3, kind: input, shape index: {}]   ;;  %s413_s4 = inlined_call_operand.vmem [shape: f32[1,32], index: 4, kind: input, shape index: {}]   ;;  %s414_s5 = inlined_call_operand.hbm [shape: f32[16,32], index: 5, kind: output, shape index: {}]  }
   0x1   :  { %v45_v0 = vld [vmem:[%s410_s1 + $0x78] sm:$0xff]  ;;  %v44_v1 = vld [vmem:[%s410_s1 + $0x70] sm:$0xff] }
   0x2   :  { %194 = vmatpush.xpose.msk.msra.mxu0 %vm25_vm0, %v45_v0  ;;  %212 = vmatpush.xpose.msk.msra.mxu2 %vm25_vm0, %v45_v0 }
   0x3   :  { %10 = vsyncpa [#allocation4], 0  ;;  %v43_v2 = vld [vmem:[%s410_s1 + $0x68] sm:$0xff]  ;;  %v42_v3 = vld [vmem:[%s410_s1 + $0x60] sm:$0xff]  ;;  %v260_v22 = vmov 0.0   ;;  %s182_s16 = sshll.u32 %s414_s5, 4  ;;  %s183_s16 = int_to_ptr.hbm [resolvable:$true] %s182_s16 }
   0x4   :  { %v41_v4 = vld [vmem:[%s410_s1 + $0x58] sm:$0xff]  ;;  %v40_v5 = vld [vmem:[%s410_s1 + $0x50] sm:$0xff]  ;;  %v39_v6 = vld [vmem:[%s410_s1 + $0x48] sm:$0xff]  ;;  %26 = vst.msk [vmem:[#allocation2] sm:$0xff] %vm25_vm0, %v260_v22  ;;  %s263_s17 = smov 8  }
   0x5   :  { %v38_v7 = vld [vmem:[%s410_s1 + $0x40] sm:$0xff]  ;;  %v37_v8 = vld [vmem:[%s410_s1 + $0x38] sm:$0xff]  ;;  %v36_v10 = vld [vmem:[%s410_s1 + $0x30] sm:$0xff]  ;;  %27 = vst.msk [vmem:[#allocation2 + $0x8] sm:$0xff] %vm25_vm0, %v260_v22 }
   0x6   :  { %195 = vmatpush.xpose.msk.msra.mxu0 %vm25_vm0, %v44_v1  ;;  %213 = vmatpush.xpose.msk.msra.mxu2 %vm25_vm0, %v44_v1  ;;  %v135_v9 = vld [vmem:[%s412_s3 + $0x18] sm:$0xff]  ;;  %v134_v11 = vld [vmem:[%s412_s3 + $0x10] sm:$0xff]  ;;  %v35_v12 = vld [vmem:[%s410_s1 + $0x28] sm:$0xff] }
   0x7   :  { %148 = vmatpush.xpose.msra.mxu1 %v135_v9  ;;  %v133_v13 = vld [vmem:[%s412_s3 + $0x8] sm:$0xff]  ;;  %v34_v14 = vld [vmem:[%s410_s1 + $0x20] sm:$0xff]  ;;  %v33_v15 = vld [vmem:[%s410_s1 + $0x18] sm:$0xff] }
   0x8   :  { %v32_v16 = vld [vmem:[%s410_s1 + $0x10] sm:$0xff]  ;;  %v31_v17 = vld [vmem:[%s410_s1 + $0x8] sm:$0xff]  ;;  %v30_v18 = vld [vmem:[%s410_s1] sm:$0xff] }
   0x9   :  { %v28_v19 = vld [vmem:[%s409_s0] sm:$0xff]  ;;  %v29_v20 = vld [vmem:[%s409_s0 + $0x8] sm:$0xff] }
   0xa   :  { %196 = vmatpush.xpose.msk.msra.mxu0 %vm25_vm0, %v43_v2  ;;  %214 = vmatpush.xpose.msk.msra.mxu2 %vm25_vm0, %v43_v2  ;;  %v132_v21 = vld [vmem:[%s412_s3] sm:$0xff] }
   0xb   :  { %149 = vmatpush.xpose.msra.mxu1 %v134_v11  ;;  %v232_v23 = vld [vmem:[%s411_s2] ss:$0 sm:$0xff]  ;;  %s261_s2 = smov [#allocation3]  }
   0xc   :  { %v130_v30 = vld [vmem:[#allocation2] sm:$0xff]  ;;  %v131_v33 = vld [vmem:[#allocation2 + $0x8] sm:$0xff]  ;;  %s180_s13 = sshll.u32 %s261_s2, 4  ;;  %s181_s13 = int_to_ptr.vmem [resolvable:$true] %s180_s13 }
   0xd   :  { %v233_v34 = vld [vmem:[%s413_s4] ss:$0 sm:$0xff]  ;;  %s262_s4 = smov 128  }
   0xe   :  { %197 = vmatpush.xpose.msk.msra.mxu0 %vm25_vm0, %v42_v3  ;;  %215 = vmatpush.xpose.msk.msra.mxu2 %vm25_vm0, %v42_v3 }
   0xf   :  { %150 = vmatpush.xpose.msra.mxu1 %v133_v13 }
  0x12   :  { %198 = vmatpush.xpose.msk.msra.mxu0 %vm25_vm0, %v41_v4  ;;  %216 = vmatpush.xpose.msk.msra.mxu2 %vm25_vm0, %v41_v4 }
  0x13   :  { %151 = vmatpush.xpose.msra.mxu1 %v132_v21 }
  0x16   :  { %199 = vmatpush.xpose.msk.msra.mxu0 %vm25_vm0, %v40_v5  ;;  %217 = vmatpush.xpose.msk.msra.mxu2 %vm25_vm0, %v40_v5 }
  0x1a   :  { %200 = vmatpush.xpose.msk.msra.mxu0 %vm25_vm0, %v39_v6  ;;  %218 = vmatpush.xpose.msk.msra.mxu2 %vm25_vm0, %v39_v6 }
  0x1e   :  { %201 = vmatpush.xpose.msk.msra.mxu0 %vm25_vm0, %v38_v7  ;;  %219 = vmatpush.xpose.msk.msra.mxu2 %vm25_vm0, %v38_v7 }
  0x22   :  { %202 = vmatpush.xpose.msk.msra.mxu0 %vm25_vm0, %v37_v8  ;;  %220 = vmatpush.xpose.msk.msra.mxu2 %vm25_vm0, %v37_v8 }
  0x26   :  { %203 = vmatpush.xpose.msk.msra.mxu0 %vm25_vm0, %v36_v10  ;;  %221 = vmatpush.xpose.msk.msra.mxu2 %vm25_vm0, %v36_v10 }
  0x2a   :  { %204 = vmatpush.xpose.msk.msra.mxu0 %vm25_vm0, %v35_v12  ;;  %222 = vmatpush.xpose.msk.msra.mxu2 %vm25_vm0, %v35_v12 }
  0x2e   :  { %205 = vmatpush.xpose.msk.msra.mxu0 %vm25_vm0, %v34_v14  ;;  %223 = vmatpush.xpose.msk.msra.mxu2 %vm25_vm0, %v34_v14 }
  0x32   :  { %206 = vmatpush.xpose.msk.msra.mxu0 %vm25_vm0, %v33_v15  ;;  %224 = vmatpush.xpose.msk.msra.mxu2 %vm25_vm0, %v33_v15 }
  0x36   :  { %207 = vmatpush.xpose.msk.msra.mxu0 %vm25_vm0, %v32_v16  ;;  %225 = vmatpush.xpose.msk.msra.mxu2 %vm25_vm0, %v32_v16 }
  0x3a   :  { %208 = vmatpush.xpose.msk.msra.mxu0 %vm25_vm0, %v31_v17  ;;  %226 = vmatpush.xpose.msk.msra.mxu2 %vm25_vm0, %v31_v17 }
  0x3e   :  { %209 = vmatpush.xpose.msk.msra.mxu0 %vm25_vm0, %v30_v18  ;;  %227 = vmatpush.xpose.msk.msra.mxu2 %vm25_vm0, %v30_v18 }
  0x41   :  { %210 = vmatmul.msk.f32.vlgmr.msra.gmra.mxu0 %vm25_vm0, %v28_v19  ;;  %211 = vmatmul.msk.f32.vlgmr.msra.gmra.mxu2 %vm25_vm0, %v29_v20 }
  0xbe   :  { %v122_v24 = vpop.f32.mrf.mxu0 }
  0xbf   :  { %v123_v25 = vadd.f32 %v232_v23, %v122_v24 }
  0xc1   :  { %v128_v26 = vmax.f32 %v123_v25, 0.0 }
  0xc3   :  { %152 = vmatmul.f32.vlgmr.msra.gmra.mxu1 %v128_v26 }
  0xc4   :  { %v125_v27 = vpop.f32.mrf.mxu2 }
  0xc5   :  { %v126_v28 = vadd.f32 %v232_v23, %v125_v27 }
  0xc7   :  { %v129_v29 = vmax.f32 %v126_v28, 0.0 }
  0xcb   :  { %155 = vmatmul.f32.gmra.mxu1 %v129_v29 }
 0x140   :  { %v153_v31 = vpop.f32.mrf.mxu1 }
 0x141   :  { %v159_v32 = vadd.f32 %v153_v31, %v130_v30 }
 0x143   :  { %161 = vst.msk [vmem:[#allocation2] sm:$0xff] %vm25_vm0, %v159_v32 }
 0x148   :  { %v156_v35 = vpop.f32.mrf.mxu1 }
 0x149   :  { %v160_v36 = vadd.f32 %v156_v35, %v131_v33 }
 0x14a   :  { %v166_v37 = vld [vmem:[#allocation2] sm:$0xff] }
 0x14b   :  { %162 = vst.msk [vmem:[#allocation2 + $0x8] sm:$0xff] %vm25_vm0, %v160_v36  ;;  %v172_v38 = vadd.f32 %v233_v34, %v166_v37 }
 0x14d   :  { %174 = vst.msk [vmem:[#allocation3] sm:$0xff] %vm25_vm0, %v172_v38 }
 0x152   :  { %v167_v39 = vld [vmem:[#allocation2 + $0x8] sm:$0xff] }
 0x153   :  { %v173_v40 = vadd.f32 %v233_v34, %v167_v39 }
 0x155   :  { %175 = vst.msk [vmem:[#allocation3 + $0x8] sm:$0xff] %vm25_vm0, %v173_v40 }
 0x156   :  { %188 = dma.vmem_to_hbm [thread:$0]  %s181_s13, 256, %s183_s16, [#allocation4], %s262_s4, %s262_s4, %s263_s17  }
 0x157   :  { %258 = dma.done.wait [#allocation4], 256  }
 0x158   :  { %259 = vsyncadd [#allocation4], 4294967040 }
 0x159   :  { %193 = vsyncpa [#allocation4], 1 }

</bundles_post_ra>
